<compile_context>
chip_gen: v6e
topology: v6e:2x2x1
jax: 0.10.0
libtpu: 0.0.40
codegen_flags: <defaults>
</compile_context>

<pallas_src>
import functools

import jax
import jax.numpy as jnp
from jax.experimental import pallas as pl
from jax.experimental.pallas import tpu as pltpu


def _res_block_kernel(xp_ref, b1m_ref, b2m_ref, scale_ref, shift_ref,
                      bias2_ref, o_ref, mid_ref, *, H, WC):
    # xp_ref  : (1, H+2, WC)  row-padded, lane-packed (w*C + c) input image
    # b1m_ref : (3, WC, WC)   conv1 block-banded weights, one matrix per dy
    # b2m_ref : (3, WC, WC)   conv2 block-banded weights (pre-scaled by 0.1)
    # scale_ref, shift_ref, bias2_ref : (1, WC) packed per-channel vectors
    #                                   (b1 folded into shift, 0.1*b2 in bias2)
    # o_ref   : (1, H, WC)
    # mid_ref : (H+2, WC) VMEM scratch: row-padded ReLU(BN(conv1)) activations

    # ---- conv1: 3 matmuls (one per row tap dy); width taps + W zero-padding
    # are encoded in the banded weight matrices, so K = N = WC on the MXU. ----
    acc = jnp.dot(xp_ref[0, 0:H, :], b1m_ref[0],
                  preferred_element_type=jnp.float32)
    acc += jnp.dot(xp_ref[0, 1:H + 1, :], b1m_ref[1],
                   preferred_element_type=jnp.float32)
    acc += jnp.dot(xp_ref[0, 2:H + 2, :], b1m_ref[2],
                   preferred_element_type=jnp.float32)

    # ---- BatchNorm (eval mode, conv1 bias folded into shift) + ReLU ----
    acc = jnp.maximum(acc * scale_ref[...] + shift_ref[...], 0.0)

    # ---- stage into row-padded scratch; only the 2 halo rows are zeroed ----
    mid_ref[0:1, :] = jnp.zeros((1, WC), jnp.float32)
    mid_ref[H + 1:H + 2, :] = jnp.zeros((1, WC), jnp.float32)
    mid_ref[1:H + 1, :] = acc

    # ---- conv2 (weights pre-scaled by 0.1) ----
    acc2 = jnp.dot(mid_ref[0:H, :], b2m_ref[0],
                   preferred_element_type=jnp.float32)
    acc2 += jnp.dot(mid_ref[1:H + 1, :], b2m_ref[1],
                    preferred_element_type=jnp.float32)
    acc2 += jnp.dot(mid_ref[2:H + 2, :], b2m_ref[2],
                    preferred_element_type=jnp.float32)

    # ---- residual: out = 0.1*conv2(relu(bn(conv1(x)))) + identity ----
    identity = xp_ref[0, 1:H + 1, :]
    o_ref[...] = (acc2 + bias2_ref[...] + identity).reshape(1, H, WC)


def _band_matrices(w, W):
    """Fold a (C_out, C_in, 3, 3) conv weight into 3 block-banded (W*C, W*C)
    matrices (one per row tap dy) acting on lane-packed (w*C + c) rows.

    B[dy][w_in*C + c_in, w_out*C + c_out] = w[c_out, c_in, dy, w_in - w_out + 1]
    when |w_in - w_out| <= 1, else 0 -- which also encodes the zero padding
    along the width axis (out-of-range taps simply have no entries)."""
    C = w.shape[1]
    w_io = jnp.transpose(w, (2, 3, 1, 0)).astype(jnp.float32)   # (3,3,Cin,Cout)
    mats = []
    for dy in range(3):
        B = jnp.zeros((W * C, W * C), jnp.float32)
        for dx in range(3):
            # S[w_in, w_out] = 1 iff w_in - w_out == dx - 1
            S = jnp.eye(W, k=-(dx - 1), dtype=jnp.float32)
            B = B + jnp.kron(S, w_io[dy, dx])
        mats.append(B)
    return jnp.stack(mats)                                       # (3, WC, WC)


def reg_residual_block(x_nchw, w1, b1, gamma, beta, rmean, rvar, w2, b2,
                       eps=1e-5):
    """Pallas implementation of Reg_ResidualBlock.forward (NCHW in / NCHW out)."""
    N, C, H, W = x_nchw.shape
    WC = W * C

    # NCHW -> NHWC -> lane-packed (N, H, W*C); pad only the row (H) axis — the
    # width zero-padding lives inside the banded weight matrices.
    x = jnp.transpose(x_nchw, (0, 2, 3, 1)).astype(jnp.float32)
    xp = jnp.pad(x.reshape(N, H, WC), ((0, 0), (1, 1), (0, 0)))

    # Fold eval-mode BN + conv1 bias into per-channel scale/shift; fold the
    # 0.1 residual scale into conv2's weights/bias. Tile to the packed layout.
    scale = (gamma / jnp.sqrt(rvar + eps)).astype(jnp.float32)
    shift = (beta.astype(jnp.float32)
             + scale * (b1.astype(jnp.float32) - rmean.astype(jnp.float32)))
    scale_p = jnp.tile(scale, W).reshape(1, WC)
    shift_p = jnp.tile(shift, W).reshape(1, WC)
    bias2_p = jnp.tile(0.1 * b2.astype(jnp.float32), W).reshape(1, WC)

    # TODO(synk): the banded-matrix formulation is sized (W*C)^2 and targets
    # small/medium W*C; for very large channel counts switch to K-tiled taps.
    b1m = _band_matrices(w1, W)
    b2m = _band_matrices(w2, W) * 0.1

    kernel = functools.partial(_res_block_kernel, H=H, WC=WC)

    out = pl.pallas_call(
        kernel,
        out_shape=jax.ShapeDtypeStruct((N, H, WC), jnp.float32),
        grid_spec=pltpu.PrefetchScalarGridSpec(
            num_scalar_prefetch=0,
            grid=(N,),
            in_specs=[
                pl.BlockSpec((1, H + 2, WC), lambda n: (n, 0, 0)),
                pl.BlockSpec((3, WC, WC), lambda n: (0, 0, 0)),
                pl.BlockSpec((3, WC, WC), lambda n: (0, 0, 0)),
                pl.BlockSpec((1, WC), lambda n: (0, 0)),
                pl.BlockSpec((1, WC), lambda n: (0, 0)),
                pl.BlockSpec((1, WC), lambda n: (0, 0)),
            ],
            out_specs=pl.BlockSpec((1, H, WC), lambda n: (n, 0, 0)),
            scratch_shapes=[pltpu.VMEM((H + 2, WC), jnp.float32)],
        ),
        compiler_params=pltpu.CompilerParams(
            dimension_semantics=("parallel",)),
    )(xp, b1m, b2m, scale_p, shift_p, bias2_p)

    # lane-packed (N, H, W*C) -> NHWC (free reshape) -> NCHW.
    return jnp.transpose(out.reshape(N, H, W, C), (0, 3, 1, 2))


def _reference(x, w1, b1, gamma, beta, rmean, rvar, w2, b2, eps=1e-5):
    """Pure-JAX reference (matches PyTorch forward with eval-mode BN)."""
    dn = ("NCHW", "OIHW", "NCHW")
    y = jax.lax.conv_general_dilated(x, w1, (1, 1), ((1, 1), (1, 1)),
                                     dimension_numbers=dn)
    y = y + b1[None, :, None, None]
    y = (y - rmean[None, :, None, None]) / jnp.sqrt(rvar[None, :, None, None] + eps)
    y = y * gamma[None, :, None, None] + beta[None, :, None, None]
    y = jnp.maximum(y, 0.0)
    y = jax.lax.conv_general_dilated(y, w2, (1, 1), ((1, 1), (1, 1)),
                                     dimension_numbers=dn)
    y = y + b2[None, :, None, None]
    return y * 0.1 + x


if __name__ == "__main__":
    N, C, H, W = 2, 8, 16, 16    # W*C = 128 -> exactly lane-dense

    key = jax.random.PRNGKey(0)
    ks = jax.random.split(key, 9)
    w1 = jax.random.normal(ks[0], (C, C, 3, 3), jnp.float32) * 0.1
    b1 = jax.random.normal(ks[1], (C,), jnp.float32) * 0.1
    gamma = 1.0 + 0.1 * jax.random.normal(ks[2], (C,), jnp.float32)
    beta = 0.1 * jax.random.normal(ks[3], (C,), jnp.float32)
    rmean = 0.1 * jax.random.normal(ks[4], (C,), jnp.float32)
    rvar = jax.random.uniform(ks[5], (C,), jnp.float32, minval=0.5, maxval=1.5)
    w2 = jax.random.normal(ks[6], (C, C, 3, 3), jnp.float32) * 0.1
    b2 = jax.random.normal(ks[7], (C,), jnp.float32) * 0.1
    x = jax.random.normal(ks[8], (N, C, H, W), jnp.float32)

    out = reg_residual_block(x, w1, b1, gamma, beta, rmean, rvar, w2, b2)
    out = jax.block_until_ready(out)

    ref = _reference(x, w1, b1, gamma, beta, rmean, rvar, w2, b2)
    assert out.shape == (N, C, H, W)
    assert jnp.allclose(out, ref, atol=1e-4, rtol=1e-4), (
        f"max abs err = {jnp.max(jnp.abs(out - ref))}")

    print("KERNEL_OK")
</pallas_src>

<mosaic_0001>
module attributes {stable_mosaic.version = 11 : i64} {
  func.func @_res_block_kernel(%arg0: i32, %arg1: memref<1x18x128xf32, #tpu.memory_space<vmem>>, %arg2: memref<3x128x128xf32, #tpu.memory_space<vmem>>, %arg3: memref<3x128x128xf32, #tpu.memory_space<vmem>>, %arg4: memref<1x128xf32, #tpu.memory_space<vmem>>, %arg5: memref<1x128xf32, #tpu.memory_space<vmem>>, %arg6: memref<1x128xf32, #tpu.memory_space<vmem>>, %arg7: memref<1x16x128xf32, #tpu.memory_space<vmem>>, %arg8: memref<18x128xf32, #tpu.memory_space<vmem>>) attributes {dimension_semantics = [#tpu.dimension_semantics<parallel>], iteration_bounds = array<i64: 2>, scalar_prefetch = 0 : i64, scratch_operands = 1 : i64, tpu.core_type = #tpu.core_type<tc>, window_params = [{transform_indices = @transform_0, window_bounds = array<i64: 1, 18, 128>}, {pipeline_mode = #tpu.pipeline_mode<synchronous>, transform_indices = @transform_1, window_bounds = array<i64: 3, 128, 128>}, {pipeline_mode = #tpu.pipeline_mode<synchronous>, transform_indices = @transform_2, window_bounds = array<i64: 3, 128, 128>}, {pipeline_mode = #tpu.pipeline_mode<synchronous>, transform_indices = @transform_3, window_bounds = array<i64: 1, 128>}, {pipeline_mode = #tpu.pipeline_mode<synchronous>, transform_indices = @transform_4, window_bounds = array<i64: 1, 128>}, {pipeline_mode = #tpu.pipeline_mode<synchronous>, transform_indices = @transform_5, window_bounds = array<i64: 1, 128>}, {transform_indices = @transform_6, window_bounds = array<i64: 1, 16, 128>}]} {
    %c0 = arith.constant 0 : index
    %c0_0 = arith.constant 0 : index
    %c0_1 = arith.constant 0 : index
    %0 = vector.load %arg1[%c0, %c0_0, %c0_1] : memref<1x18x128xf32, #tpu.memory_space<vmem>>, vector<1x16x128xf32>
    %1 = vector.shape_cast %0 : vector<1x16x128xf32> to vector<16x128xf32>
    %c0_2 = arith.constant 0 : index
    %c0_3 = arith.constant 0 : index
    %c0_4 = arith.constant 0 : index
    %2 = vector.load %arg2[%c0_2, %c0_3, %c0_4] : memref<3x128x128xf32, #tpu.memory_space<vmem>>, vector<1x128x128xf32>
    %3 = vector.shape_cast %2 : vector<1x128x128xf32> to vector<128x128xf32>
    %cst = arith.constant dense<0.000000e+00> : vector<16x128xf32>
    %4 = tpu.matmul %1, %3, %cst {dimension_numbers = #tpu.dot_dimension_numbers<[1], [0], [0], [1], [0, 0, 1, 1], [], []>} : vector<16x128xf32>, vector<128x128xf32>, vector<16x128xf32> -> vector<16x128xf32>
    %c0_5 = arith.constant 0 : index
    %c1 = arith.constant 1 : index
    %c0_6 = arith.constant 0 : index
    %5 = vector.load %arg1[%c0_5, %c1, %c0_6] : memref<1x18x128xf32, #tpu.memory_space<vmem>>, vector<1x16x128xf32>
    %6 = vector.shape_cast %5 : vector<1x16x128xf32> to vector<16x128xf32>
    %c1_7 = arith.constant 1 : index
    %c0_8 = arith.constant 0 : index
    %c0_9 = arith.constant 0 : index
    %7 = vector.load %arg2[%c1_7, %c0_8, %c0_9] : memref<3x128x128xf32, #tpu.memory_space<vmem>>, vector<1x128x128xf32>
    %8 = vector.shape_cast %7 : vector<1x128x128xf32> to vector<128x128xf32>
    %cst_10 = arith.constant dense<0.000000e+00> : vector<16x128xf32>
    %9 = tpu.matmul %6, %8, %cst_10 {dimension_numbers = #tpu.dot_dimension_numbers<[1], [0], [0], [1], [0, 0, 1, 1], [], []>} : vector<16x128xf32>, vector<128x128xf32>, vector<16x128xf32> -> vector<16x128xf32>
    %10 = arith.addf %4, %9 : vector<16x128xf32>
    %c0_11 = arith.constant 0 : index
    %c2 = arith.constant 2 : index
    %c0_12 = arith.constant 0 : index
    %11 = vector.load %arg1[%c0_11, %c2, %c0_12] : memref<1x18x128xf32, #tpu.memory_space<vmem>>, vector<1x16x128xf32>
    %12 = vector.shape_cast %11 : vector<1x16x128xf32> to vector<16x128xf32>
    %c2_13 = arith.constant 2 : index
    %c0_14 = arith.constant 0 : index
    %c0_15 = arith.constant 0 : index
    %13 = vector.load %arg2[%c2_13, %c0_14, %c0_15] : memref<3x128x128xf32, #tpu.memory_space<vmem>>, vector<1x128x128xf32>
    %14 = vector.shape_cast %13 : vector<1x128x128xf32> to vector<128x128xf32>
    %cst_16 = arith.constant dense<0.000000e+00> : vector<16x128xf32>
    %15 = tpu.matmul %12, %14, %cst_16 {dimension_numbers = #tpu.dot_dimension_numbers<[1], [0], [0], [1], [0, 0, 1, 1], [], []>} : vector<16x128xf32>, vector<128x128xf32>, vector<16x128xf32> -> vector<16x128xf32>
    %16 = arith.addf %10, %15 : vector<16x128xf32>
    %c0_17 = arith.constant 0 : index
    %c0_18 = arith.constant 0 : index
    %17 = vector.load %arg4[%c0_17, %c0_18] : memref<1x128xf32, #tpu.memory_space<vmem>>, vector<1x128xf32>
    %18 = vector.broadcast %17 : vector<1x128xf32> to vector<16x128xf32>
    %19 = arith.mulf %16, %18 : vector<16x128xf32>
    %c0_19 = arith.constant 0 : index
    %c0_20 = arith.constant 0 : index
    %20 = vector.load %arg5[%c0_19, %c0_20] : memref<1x128xf32, #tpu.memory_space<vmem>>, vector<1x128xf32>
    %21 = vector.broadcast %20 : vector<1x128xf32> to vector<16x128xf32>
    %22 = arith.addf %19, %21 : vector<16x128xf32>
    %cst_21 = arith.constant 0.000000e+00 : f32
    %23 = vector.broadcast %cst_21 : f32 to vector<16x128xf32>
    %24 = arith.maximumf %22, %23 : vector<16x128xf32>
    %cst_22 = arith.constant 0.000000e+00 : f32
    %25 = vector.broadcast %cst_22 : f32 to vector<1x128xf32>
    %c0_23 = arith.constant 0 : index
    %c0_24 = arith.constant 0 : index
    %26 = vector.load %arg8[%c0_23, %c0_24] : memref<18x128xf32, #tpu.memory_space<vmem>>, vector<1x128xf32>
    tpu.vector_store %arg8[%c0_23, %c0_24], %25 {strides = array<i32>} : memref<18x128xf32, #tpu.memory_space<vmem>>, vector<1x128xf32>,
    %cst_25 = arith.constant 0.000000e+00 : f32
    %27 = vector.broadcast %cst_25 : f32 to vector<1x128xf32>
    %c17 = arith.constant 17 : index
    %c0_26 = arith.constant 0 : index
    %28 = vector.load %arg8[%c17, %c0_26] : memref<18x128xf32, #tpu.memory_space<vmem>>, vector<1x128xf32>
    tpu.vector_store %arg8[%c17, %c0_26], %27 {strides = array<i32>} : memref<18x128xf32, #tpu.memory_space<vmem>>, vector<1x128xf32>,
    %c1_27 = arith.constant 1 : index
    %c0_28 = arith.constant 0 : index
    %29 = vector.load %arg8[%c1_27, %c0_28] : memref<18x128xf32, #tpu.memory_space<vmem>>, vector<16x128xf32>
    tpu.vector_store %arg8[%c1_27, %c0_28], %24 {strides = array<i32>} : memref<18x128xf32, #tpu.memory_space<vmem>>, vector<16x128xf32>,
    %c0_29 = arith.constant 0 : index
    %c0_30 = arith.constant 0 : index
    %30 = vector.load %arg8[%c0_29, %c0_30] : memref<18x128xf32, #tpu.memory_space<vmem>>, vector<16x128xf32>
    %c0_31 = arith.constant 0 : index
    %c0_32 = arith.constant 0 : index
    %c0_33 = arith.constant 0 : index
    %31 = vector.load %arg3[%c0_31, %c0_32, %c0_33] : memref<3x128x128xf32, #tpu.memory_space<vmem>>, vector<1x128x128xf32>
    %32 = vector.shape_cast %31 : vector<1x128x128xf32> to vector<128x128xf32>
    %cst_34 = arith.constant dense<0.000000e+00> : vector<16x128xf32>
    %33 = tpu.matmul %30, %32, %cst_34 {dimension_numbers = #tpu.dot_dimension_numbers<[1], [0], [0], [1], [0, 0, 1, 1], [], []>} : vector<16x128xf32>, vector<128x128xf32>, vector<16x128xf32> -> vector<16x128xf32>
    %c1_35 = arith.constant 1 : index
    %c0_36 = arith.constant 0 : index
    %34 = vector.load %arg8[%c1_35, %c0_36] : memref<18x128xf32, #tpu.memory_space<vmem>>, vector<16x128xf32>
    %c1_37 = arith.constant 1 : index
    %c0_38 = arith.constant 0 : index
    %c0_39 = arith.constant 0 : index
    %35 = vector.load %arg3[%c1_37, %c0_38, %c0_39] : memref<3x128x128xf32, #tpu.memory_space<vmem>>, vector<1x128x128xf32>
    %36 = vector.shape_cast %35 : vector<1x128x128xf32> to vector<128x128xf32>
    %cst_40 = arith.constant dense<0.000000e+00> : vector<16x128xf32>
    %37 = tpu.matmul %34, %36, %cst_40 {dimension_numbers = #tpu.dot_dimension_numbers<[1], [0], [0], [1], [0, 0, 1, 1], [], []>} : vector<16x128xf32>, vector<128x128xf32>, vector<16x128xf32> -> vector<16x128xf32>
    %38 = arith.addf %33, %37 : vector<16x128xf32>
    %c2_41 = arith.constant 2 : index
    %c0_42 = arith.constant 0 : index
    %39 = vector.load %arg8[%c2_41, %c0_42] : memref<18x128xf32, #tpu.memory_space<vmem>>, vector<16x128xf32>
    %c2_43 = arith.constant 2 : index
    %c0_44 = arith.constant 0 : index
    %c0_45 = arith.constant 0 : index
    %40 = vector.load %arg3[%c2_43, %c0_44, %c0_45] : memref<3x128x128xf32, #tpu.memory_space<vmem>>, vector<1x128x128xf32>
    %41 = vector.shape_cast %40 : vector<1x128x128xf32> to vector<128x128xf32>
    %cst_46 = arith.constant dense<0.000000e+00> : vector<16x128xf32>
    %42 = tpu.matmul %39, %41, %cst_46 {dimension_numbers = #tpu.dot_dimension_numbers<[1], [0], [0], [1], [0, 0, 1, 1], [], []>} : vector<16x128xf32>, vector<128x128xf32>, vector<16x128xf32> -> vector<16x128xf32>
    %43 = arith.addf %38, %42 : vector<16x128xf32>
    %c0_47 = arith.constant 0 : index
    %c1_48 = arith.constant 1 : index
    %c0_49 = arith.constant 0 : index
    %44 = vector.load %arg1[%c0_47, %c1_48, %c0_49] : memref<1x18x128xf32, #tpu.memory_space<vmem>>, vector<1x16x128xf32>
    %45 = vector.shape_cast %44 : vector<1x16x128xf32> to vector<16x128xf32>
    %c0_50 = arith.constant 0 : index
    %c0_51 = arith.constant 0 : index
    %46 = vector.load %arg6[%c0_50, %c0_51] : memref<1x128xf32, #tpu.memory_space<vmem>>, vector<1x128xf32>
    %47 = vector.broadcast %46 : vector<1x128xf32> to vector<16x128xf32>
    %48 = arith.addf %43, %47 : vector<16x128xf32>
    %49 = arith.addf %48, %45 : vector<16x128xf32>
    %50 = vector.shape_cast %49 : vector<16x128xf32> to vector<1x16x128xf32>
    %c0_52 = arith.constant 0 : index
    %c0_53 = arith.constant 0 : index
    %c0_54 = arith.constant 0 : index
    %51 = vector.load %arg7[%c0_52, %c0_53, %c0_54] : memref<1x16x128xf32, #tpu.memory_space<vmem>>, vector<1x16x128xf32>
    tpu.vector_store %arg7[%c0_52, %c0_53, %c0_54], %50 {strides = array<i32>} : memref<1x16x128xf32, #tpu.memory_space<vmem>>, vector<1x16x128xf32>,
    return
  }
  func.func @transform_0(%arg0: i32) -> (i32, i32, i32) {
    %c0_i32 = arith.constant 0 : i32
    %c0_i32_0 = arith.constant 0 : i32
    %c0_i32_1 = arith.constant 0 : i32
    return %arg0, %c0_i32, %c0_i32_0 : i32, i32, i32
  }
  func.func @transform_1(%arg0: i32) -> (i32, i32, i32) {
    %c0_i32 = arith.constant 0 : i32
    %c0_i32_0 = arith.constant 0 : i32
    %c0_i32_1 = arith.constant 0 : i32
    %c0_i32_2 = arith.constant 0 : i32
    return %c0_i32, %c0_i32_0, %c0_i32_1 : i32, i32, i32
  }
  func.func @transform_2(%arg0: i32) -> (i32, i32, i32) {
    %c0_i32 = arith.constant 0 : i32
    %c0_i32_0 = arith.constant 0 : i32
    %c0_i32_1 = arith.constant 0 : i32
    %c0_i32_2 = arith.constant 0 : i32
    return %c0_i32, %c0_i32_0, %c0_i32_1 : i32, i32, i32
  }
  func.func @transform_3(%arg0: i32) -> (i32, i32) {
    %c0_i32 = arith.constant 0 : i32
    %c0_i32_0 = arith.constant 0 : i32
    %c0_i32_1 = arith.constant 0 : i32
    return %c0_i32, %c0_i32_0 : i32, i32
  }
  func.func @transform_4(%arg0: i32) -> (i32, i32) {
    %c0_i32 = arith.constant 0 : i32
    %c0_i32_0 = arith.constant 0 : i32
    %c0_i32_1 = arith.constant 0 : i32
    return %c0_i32, %c0_i32_0 : i32, i32
  }
  func.func @transform_5(%arg0: i32) -> (i32, i32) {
    %c0_i32 = arith.constant 0 : i32
    %c0_i32_0 = arith.constant 0 : i32
    %c0_i32_1 = arith.constant 0 : i32
    return %c0_i32, %c0_i32_0 : i32, i32
  }
  func.func @transform_6(%arg0: i32) -> (i32, i32, i32) {
    %c0_i32 = arith.constant 0 : i32
    %c0_i32_0 = arith.constant 0 : i32
    %c0_i32_1 = arith.constant 0 : i32
    return %arg0, %c0_i32, %c0_i32_0 : i32, i32, i32
  }
}

</mosaic_0001>

<bundles_post_ra>
// kernel: tpu_custom_call.1
= control target key start
LH: loop header
LB: loop body
LE: loop exit
PB: predicated region body
PF: predicated region fallthrough
CT: control target
= control target key end

     0   :  { %11 = vsyncpa [#allocation4], 0  ;;  %s1719_s0 = inlined_call_operand.vmem [shape: f32[2,18,128], index: 0, kind: input, shape index: {}]   ;;  %s1720_s1 = inlined_call_operand.hbm [shape: f32[3,128,128], index: 1, kind: input, shape index: {}]   ;;  %s1721_s2 = inlined_call_operand.hbm [shape: f32[3,128,128], index: 2, kind: input, shape index: {}]   ;;  %s1722_s3 = inlined_call_operand.vmem [shape: f32[1,128], index: 3, kind: input, shape index: {}]   ;;  %s1723_s4 = inlined_call_operand.vmem [shape: f32[1,128], index: 4, kind: input, shape index: {}]   ;;  %s1724_s5 = inlined_call_operand.vmem [shape: f32[1,128], index: 5, kind: input, shape index: {}]   ;;  %s1725_s6 = inlined_call_operand.hbm [shape: f32[2,16,128], index: 6, kind: output, shape index: {}]  }
   0x1   :  { %12 = vsyncpa [#allocation7], 0 }
   0x2   :  { %13 = vsyncpa [#allocation5], 0 }
   0x3   :  { %15 = vsyncpa [#allocation5 + $0x1], 0  ;;  %s1551_s21 = smov 0   ;;  %s1553_s22 = smov 0  }
   0x4   :  { %s1555_s23 = smov 0   ;;  %s1557_s24 = smov 0  }
   0x5 LB: > { %s1572_s25 = sadd.s32 4294967295, %s1506_s24   ;;  %s983_s26 = sadd.s32 4294967294, %s1506_s24   ;;  %s1506_s24 = sphi %s1557_s24, %s1739_s24   ;;  %s1502_s23 = sphi %s1555_s23, %s1738_s23   ;;  %s1498_s22 = sphi %s1553_s22, %s1737_s22   ;;  %s1494_s21 = sphi %s1551_s21, %s1736_s21  }
   0x6   : > { %s1576_s27 = sadd.s32 1, %s1506_s24   ;;  %s159_s28 = sadd.s32 1, %s1502_s23 }
   0x7   : > { %s156_s29 = ssub.s32 %s1506_s24, %s1576_s27  ;;  %p169_p0 = scmp.ne.s32.totalorder %s1502_s23, %s1498_s22 }
   0x8   : > { %p157_p1 = scmp.eq.s32.totalorder %s156_s29, 0  ;;  %p170_p2 = scmp.eq.s32.totalorder %s1572_s25, 1 }
   0x9   : > { %p175_p3 = scmp.ne.s32.totalorder %s1498_s22, %s1494_s21  ;;  %p176_p4 = scmp.eq.s32.totalorder %s983_s26, 1 }
   0xa   : > { %s1587_s30 = scalar_select %p157_p1, %s1502_s23, %s159_s28  }
   0xb   : > { %p1589_p5 = por %p170_p2, %p169_p0  ;;  %p1593_p6 = por %p176_p4, %p175_p3 }
   0xc   : > { %p984_p7 = scmp.ge.s32.totalorder %s1506_s24, 1  ;;  %p183_p8 = scmp.lt.s32.totalorder %s1506_s24, 3 }
   0xd   : > { %s1728_s8 = scalar_select %p1593_p6, 1, 0 }
   0xe   : > { %p1726_p9 = scmp.eq.s32.totalorder %s1572_s25, 0  ;;  %p1600_p10 = pnand %p984_p7, %p183_p8 }
   0xf   : > { %s1508_s10 = smov [#allocation3]   ;;  %s1509_s13 = smov [#allocation6]  }
  0x10   : > { %s195_s11 = sshll.u32 %s1508_s10, 4  ;;  %p1331_p11 = pneg %p1600_p10  ;;  %s196_s11 = int_to_ptr.vmem [resolvable:$true] %s195_s11 }
  0x11   : > { %s208_s14 = sshll.u32 %s1509_s13, 4  ;;  %s1397_s15 = scalar_lea.vmem %s196_s11, 6144  ;;  %s209_s14 = int_to_ptr.vmem [resolvable:$true] %s208_s14 }
  0x12   : > { %p1608_p12 = pnand %p1726_p9, %p1331_p11  ;;  %p1398_p0 = scmp.ne.s32.totalorder %s196_s11, %s1397_s15 }
  0x13   : > { %p1405_p3 = scmp.lt.s32.totalorder %s196_s11, %s196_s11  ;;  %p1406_p4 = scmp.lt.s32.totalorder %s1397_s15, %s1397_s15 }
  0x14   : > { %p1388_p13 = pneg %p1608_p12 }
  0x15   : > { %p1407_p7 = por %p1406_p4, %p1405_p3 }
  0x16   : > { %p1400_p1 = pnand %p1398_p0, %p1388_p13 }
  0x18   : > { %p1401_p2 = pneg %p1400_p1 }
  0x1a   : > { %p1408_p8 = pnand %p1407_p7, %p1401_p2 }
  0x1c   : > { %1411 = shalt.err (!%p1408_p8)
}
  0x1d   : > { %s1510_s16 = smov 128   ;;  %s1511_s17 = smov 8  }
  0x1e   : > { %1334 = dma.hbm_to_vmem [thread:$0]  (!%p1608_p12), %s1720_s1, 6144, %s196_s11, [#allocation4], %s1510_s16, %s1510_s16, %s1511_s17  }
  0x1f   : > { %s1423_s20 = scalar_lea.vmem %s209_s14, 6144  ;;  %p1431_p9 = scmp.lt.s32.totalorder %s209_s14, %s209_s14 }
  0x20   : > { %p1424_p11 = scmp.ne.s32.totalorder %s209_s14, %s1423_s20  ;;  %p1432_p6 = scmp.lt.s32.totalorder %s1423_s20, %s1423_s20 }
  0x22   : > { %p1426_p0 = pnand %p1424_p11, %p1388_p13  ;;  %p1433_p3 = por %p1432_p6, %p1431_p9 }
  0x24   : > { %p1427_p1 = pneg %p1426_p0 }
  0x26   : > { %p1434_p2 = pnand %p1433_p3, %p1427_p1 }
  0x28   : > { %1437 = shalt.err (!%p1434_p2)
}
  0x29   : > { %1337 = dma.hbm_to_vmem [thread:$0]  (!%p1608_p12), %s1721_s2, 6144, %s209_s14, [#allocation7], %s1510_s16, %s1510_s16, %s1511_s17  }
  0x2a   : > { %241 = sbr.rel (%p1600_p10) target bundleno = 570 (0x23a), region = 44  ;;  %p1731_p4 = scmp.eq.s32.totalorder (!%p1600_p10), %s1572_s25, 0 }
  0x2f   : > { %1481 = dma.done.wait (%p1731_p4), [#allocation4], 6144   ;;  %p1732_p13 = pmov %p1731_p4 }
  0x30   : > { %p1733_p7 = pmov %p1731_p4 }
  0x31   : > { %1483 = vsyncadd (%p1732_p13), [#allocation4], 4294961152 }
  0x32   : > { %1485 = dma.done.wait (%p1733_p7), [#allocation7], 6144   ;;  %p1734_p6 = pmov %p1731_p4 }
  0x33   : > { %v316_v0 = vld [vmem:[#allocation3 + $0xf8] sm:$0xff]  ;;  %v315_v2 = vld [vmem:[#allocation3 + $0xf0] sm:$0xff]  ;;  %v314_v4 = vld [vmem:[#allocation3 + $0xe8] sm:$0xff]  ;;  %p275_p9 = scmp.lt.s32.totalorder %s1572_s25, 1  ;;  %s272_s17 = sand.u32 1, %s1498_s22  }
  0x34   : > { %1487 = vsyncadd (%p1734_p6), [#allocation7], 4294961152  ;;  %v297_v1 = vld [vmem:[#allocation3 + $0x78] sm:$0xff]  ;;  %1110 = vmatprep.subr.mxu0 %v316_v0  ;;  %v296_v3 = vld [vmem:[#allocation3 + $0x70] sm:$0xff]  ;;  %s991_s18 = sshll.u32 %s272_s17, 4  ;;  %s1513_s13 = smov [#allocation8]  }
  0x35   : > { %1145 = vmatprep.subr.mxu1 %v297_v1  ;;  %1111 = vmatpush3.msra.mxu0 %v316_v0  ;;  %v295_v5 = vld [vmem:[#allocation3 + $0x68] sm:$0xff]  ;;  %v313_v6 = vld [vmem:[#allocation3 + $0xe0] sm:$0xff]  ;;  %v312_v8 = vld [vmem:[#allocation3 + $0xd8] sm:$0xff]  ;;  %s276_s29 = scalar_select %p275_p9, %s1572_s25, 1 }
  0x36   : > { %1146 = vmatpush3.msra.mxu1 %v297_v1  ;;  %1112 = vmatprep.subr.mxu0 %v315_v2  ;;  %v294_v7 = vld [vmem:[#allocation3 + $0x60] sm:$0xff]  ;;  %v293_v9 = vld [vmem:[#allocation3 + $0x58] sm:$0xff]  ;;  %v311_v10 = vld [vmem:[#allocation3 + $0xd0] sm:$0xff]  ;;  %s274_s26 = scalar_lea.vmem [#allocation8], %s991_s18  ;;  %s1442_s14 = sshll.u32 %s1513_s13, 4  ;;  %s1443_s14 = int_to_ptr.vmem [resolvable:$false] %s1442_s14 }
  0x37   : > { %1147 = vmatprep.subr.mxu1 %v296_v3  ;;  %1113 = vmatpush3.msra.mxu0 %v315_v2  ;;  %v292_v11 = vld [vmem:[#allocation3 + $0x50] sm:$0xff]  ;;  %v310_v12 = vld [vmem:[#allocation3 + $0xc8] sm:$0xff]  ;;  %v309_v14 = vld [vmem:[#allocation3 + $0xc0] sm:$0xff]  ;;  %s1320_s9 = smul.u32 24, %s276_s29  ;;  %s899_s28 = sshll.u32 %s274_s26, 4  ;;  %s1671_s28 = int_to_ptr.vmem [resolvable:$true] %s899_s28 }
  0x38   : > { %1148 = vmatpush3.msra.mxu1 %v296_v3  ;;  %1114 = vmatprep.subr.mxu0 %v314_v4  ;;  %v291_v13 = vld [vmem:[#allocation3 + $0x48] sm:$0xff]  ;;  %v290_v15 = vld [vmem:[#allocation3 + $0x40] sm:$0xff]  ;;  %v308_v16 = vld [vmem:[#allocation3 + $0xb8] sm:$0xff]  ;;  %s1001_s29 = sshll.u32 %s1572_s25, 8  ;;  %s1438_s25 = scalar_lea.vmem %s1671_s28, 256 }
  0x39   : > { %1149 = vmatprep.subr.mxu1 %v295_v5  ;;  %1115 = vmatpush3.msra.mxu0 %v314_v4  ;;  %v289_v17 = vld [vmem:[#allocation3 + $0x38] sm:$0xff]  ;;  %v307_v18 = vld [vmem:[#allocation3 + $0xb0] sm:$0xff]  ;;  %v306_v20 = vld [vmem:[#allocation3 + $0xa8] sm:$0xff]  ;;  %s1645_s12 = scalar_lea.vmem %s1719_s0, %s1320_s9  ;;  %s1676_s11 = scalar_lea.hbm %s1725_s6, %s1001_s29 }
  0x3a   : > { %1150 = vmatpush3.msra.mxu1 %v295_v5  ;;  %1116 = vmatprep.subr.mxu0 %v313_v6  ;;  %v288_v19 = vld [vmem:[#allocation3 + $0x30] sm:$0xff]  ;;  %v287_v21 = vld [vmem:[#allocation3 + $0x28] sm:$0xff]  ;;  %v305_v22 = vld [vmem:[#allocation3 + $0xa0] sm:$0xff]  ;;  %p1439_p10 = scmp.ne.s32.totalorder %s1671_s28, %s1438_s25  ;;  %s1444_s15 = scalar_lea.vmem %s1443_s14, 512 }
  0x3b   : > { %1151 = vmatprep.subr.mxu1 %v294_v7  ;;  %1117 = vmatpush3.msra.mxu0 %v313_v6  ;;  %v286_v23 = vld [vmem:[#allocation3 + $0x20] sm:$0xff]  ;;  %v304_v24 = vld [vmem:[#allocation3 + $0x98] sm:$0xff]  ;;  %v303_v26 = vld [vmem:[#allocation3 + $0x90] sm:$0xff]  ;;  %p1445_p11 = scmp.lt.s32.totalorder %s1671_s28, %s1443_s14  ;;  %p1446_p0 = scmp.lt.s32.totalorder %s1444_s15, %s1438_s25 }
  0x3c   : > { %1152 = vmatpush3.msra.mxu1 %v294_v7  ;;  %1118 = vmatprep.subr.mxu0 %v312_v8  ;;  %v285_v25 = vld [vmem:[#allocation3 + $0x18] sm:$0xff]  ;;  %v284_v27 = vld [vmem:[#allocation3 + $0x10] sm:$0xff]  ;;  %v302_v28 = vld [vmem:[#allocation3 + $0x88] sm:$0xff]  ;;  %p1440_p12 = pnand %p1439_p10, %p1589_p5 }
  0x3d   : > { %1153 = vmatprep.subr.mxu1 %v293_v9  ;;  %1119 = vmatpush3.msra.mxu0 %v312_v8  ;;  %v283_v29 = vld [vmem:[#allocation3 + $0x8] sm:$0xff]  ;;  %v301_v30 = vld [vmem:[#allocation3 + $0x80] sm:$0xff]  ;;  %v1652_v34 = vld [vmem:[%s1645_s12 + $0x9] sm:$0xff]  ;;  %p1447_p1 = por %p1446_p0, %p1445_p11 }
  0x3e   : > { %1154 = vmatpush3.msra.mxu1 %v293_v9  ;;  %1120 = vmatprep.subr.mxu0 %v311_v10  ;;  %v282_v31 = vld [vmem:[#allocation3] sm:$0xff]  ;;  %v1648_v32 = vld [vmem:[%s1645_s12 + $0x1] sm:$0xff]  ;;  %v485_v36 = vld [vmem:[#allocation3 + $0x178] sm:$0xff]  ;;  %p1441_p8 = pneg %p1440_p12 }
  0x3f   : > { %1155 = vmatprep.subr.mxu1 %v292_v11  ;;  %1121 = vmatpush3.msra.mxu0 %v311_v10  ;;  %v280_v33 = vld [vmem:[%s1645_s12] sm:$0xff]  ;;  %v281_v35 = vld [vmem:[%s1645_s12 + $0x8] sm:$0xff]  ;;  %v482_v40 = vld [vmem:[#allocation3 + $0x160] sm:$0xff] }
  0x40   : > { %1156 = vmatpush3.msra.mxu1 %v292_v11  ;;  %1122 = vmatprep.subr.mxu0 %v310_v12  ;;  %v467_v37 = vld [vmem:[%s1645_s12 + $0x2] sm:$0xff]  ;;  %v481_v41 = vld [vmem:[#allocation3 + $0x158] sm:$0xff]  ;;  %v478_v44 = vld [vmem:[#allocation3 + $0x140] sm:$0xff]  ;;  %p1448_p3 = pnand %p1447_p1, %p1441_p8 }
  0x41   : > { %1157 = vmatprep.subr.mxu1 %v291_v13  ;;  %1123 = vmatpush3.msra.mxu0 %v310_v12  ;;  %v484_v38 = vld [vmem:[#allocation3 + $0x170] sm:$0xff]  ;;  %v483_v39 = vld [vmem:[#allocation3 + $0x168] sm:$0xff]  ;;  %v477_v45 = vld [vmem:[#allocation3 + $0x138] sm:$0xff] }
  0x42   : > { %1158 = vmatpush3.msra.mxu1 %v291_v13  ;;  %1124 = vmatprep.subr.mxu0 %v309_v14  ;;  %v480_v42 = vld [vmem:[#allocation3 + $0x150] sm:$0xff]  ;;  %v479_v43 = vld [vmem:[#allocation3 + $0x148] sm:$0xff]  ;;  %v474_v48 = vld [vmem:[#allocation3 + $0x120] sm:$0xff] }
  0x43   : > { %1159 = vmatprep.subr.mxu1 %v290_v15  ;;  %1125 = vmatpush3.msra.mxu0 %v309_v14  ;;  %v476_v46 = vld [vmem:[#allocation3 + $0x130] sm:$0xff]  ;;  %v475_v47 = vld [vmem:[#allocation3 + $0x128] sm:$0xff]  ;;  %v473_v49 = vld [vmem:[#allocation3 + $0x118] sm:$0xff] }
  0x44   : > { %1160 = vmatpush3.msra.mxu1 %v290_v15  ;;  %1126 = vmatprep.subr.mxu0 %v308_v16  ;;  %v472_v50 = vld [vmem:[#allocation3 + $0x110] sm:$0xff]  ;;  %v471_v51 = vld [vmem:[#allocation3 + $0x108] sm:$0xff]  ;;  %v470_v52 = vld [vmem:[#allocation3 + $0x100] sm:$0xff] }
  0x45   : > { %1161 = vmatprep.subr.mxu1 %v289_v17  ;;  %1127 = vmatpush3.msra.mxu0 %v308_v16  ;;  %v468_v53 = vld [vmem:[%s1645_s12 + $0xa] sm:$0xff]  ;;  %v621_v58 = vld [vmem:[#allocation6 + $0xe8] sm:$0xff]  ;;  %v620_v60 = vld [vmem:[#allocation6 + $0xe0] sm:$0xff]  ;;  %s1679_s12 = scalar_lea.sflag [#allocation5], %s272_s17 }
  0x46   : > { %1162 = vmatpush3.msra.mxu1 %v289_v17  ;;  %1128 = vmatprep.subr.mxu0 %v307_v18  ;;  %v623_v54 = vld [vmem:[#allocation6 + $0xf8] sm:$0xff]  ;;  %v622_v56 = vld [vmem:[#allocation6 + $0xf0] sm:$0xff]  ;;  %v602_v59 = vld [vmem:[#allocation6 + $0x68] sm:$0xff] }
  0x47   : > { %1163 = vmatprep.subr.mxu1 %v288_v19  ;;  %1129 = vmatpush3.msra.mxu0 %v307_v18  ;;  %v604_v55 = vld [vmem:[#allocation6 + $0x78] sm:$0xff]  ;;  %v603_v57 = vld [vmem:[#allocation6 + $0x70] sm:$0xff]  ;;  %v601_v61 = vld [vmem:[#allocation6 + $0x60] sm:$0xff]  ;;  %v1512_v18 = vmov 0.0  }
  0x48   : > { %1164 = vmatpush3.msra.mxu1 %v288_v19  ;;  %1130 = vmatprep.subr.mxu0 %v306_v20  ;;  %v619_v62 = vld [vmem:[#allocation6 + $0xd8] sm:$0xff]  ;;  %v618_v0 = vld [vmem:[#allocation6 + $0xd0] sm:$0xff]  ;;  %v617_v2 = vld [vmem:[#allocation6 + $0xc8] sm:$0xff]  ;;  %583 = vst [vmem:[#allocation2] sm:$0x1] %v1512_v18 }
  0x49   : > { %1165 = vmatprep.subr.mxu1 %v287_v21  ;;  %1131 = vmatpush3.msra.mxu0 %v306_v20  ;;  %v600_v63 = vld [vmem:[#allocation6 + $0x58] sm:$0xff]  ;;  %v599_v1 = vld [vmem:[#allocation6 + $0x50] sm:$0xff]  ;;  %v616_v3 = vld [vmem:[#allocation6 + $0xc0] sm:$0xff]  ;;  %584 = vst [vmem:[#allocation2 + $0x11] sm:$0x1] %v1512_v18 }
  0x4a   : > { %1166 = vmatpush3.msra.mxu1 %v287_v21  ;;  %1132 = vmatprep.subr.mxu0 %v305_v22  ;;  %v615_v4 = vld [vmem:[#allocation6 + $0xb8] sm:$0xff]  ;;  %v614_v5 = vld [vmem:[#allocation6 + $0xb0] sm:$0xff]  ;;  %v613_v6 = vld [vmem:[#allocation6 + $0xa8] sm:$0xff] }
  0x4b   : > { %1167 = vmatprep.subr.mxu1 %v286_v23  ;;  %1133 = vmatpush3.msra.mxu0 %v305_v22  ;;  %v598_v7 = vld [vmem:[#allocation6 + $0x48] sm:$0xff]  ;;  %v612_v8 = vld [vmem:[#allocation6 + $0xa0] sm:$0xff]  ;;  %v611_v10 = vld [vmem:[#allocation6 + $0x98] sm:$0xff] }
  0x4c   : > { %1168 = vmatpush3.msra.mxu1 %v286_v23  ;;  %1134 = vmatprep.subr.mxu0 %v304_v24  ;;  %v597_v9 = vld [vmem:[#allocation6 + $0x40] sm:$0xff]  ;;  %v596_v11 = vld [vmem:[#allocation6 + $0x38] sm:$0xff]  ;;  %v610_v12 = vld [vmem:[#allocation6 + $0x90] sm:$0xff] }
  0x4d   : > { %1169 = vmatprep.subr.mxu1 %v285_v25  ;;  %1135 = vmatpush3.msra.mxu0 %v304_v24  ;;  %v595_v13 = vld [vmem:[#allocation6 + $0x30] sm:$0xff]  ;;  %v609_v14 = vld [vmem:[#allocation6 + $0x88] sm:$0xff]  ;;  %v608_v16 = vld [vmem:[#allocation6 + $0x80] sm:$0xff] }
  0x4e   : > { %1170 = vmatpush3.msra.mxu1 %v285_v25  ;;  %1136 = vmatprep.subr.mxu0 %v303_v26  ;;  %v594_v15 = vld [vmem:[#allocation6 + $0x28] sm:$0xff]  ;;  %v593_v17 = vld [vmem:[#allocation6 + $0x20] sm:$0xff]  ;;  %v792_v19 = vld [vmem:[#allocation6 + $0x178] sm:$0xff] }
  0x4f   : > { %1171 = vmatprep.subr.mxu1 %v284_v27  ;;  %1137 = vmatpush3.msra.mxu0 %v303_v26  ;;  %v592_v20 = vld [vmem:[#allocation6 + $0x18] sm:$0xff]  ;;  %v591_v21 = vld [vmem:[#allocation6 + $0x10] sm:$0xff]  ;;  %v590_v22 = vld [vmem:[#allocation6 + $0x8] sm:$0xff] }
  0x50   : > { %1172 = vmatpush3.msra.mxu1 %v284_v27  ;;  %1138 = vmatprep.subr.mxu0 %v302_v28  ;;  %v589_v23 = vld [vmem:[#allocation6] sm:$0xff] }
  0x51   : > { %1173 = vmatprep.subr.mxu1 %v283_v29  ;;  %1139 = vmatpush3.msra.mxu0 %v302_v28 }
  0x52   : > { %1174 = vmatpush3.msra.mxu1 %v283_v29  ;;  %1140 = vmatprep.subr.mxu0 %v301_v30 }
  0x53   : > { %1175 = vmatprep.subr.mxu1 %v282_v31  ;;  %1141 = vmatpush3.msra.mxu0 %v301_v30  ;;  %v993_v30 = vld [vmem:[%s1722_s3] ss:$0 sm:$0xff] }
  0x54   : > { %1142 = vmatprep.mubr.f32.mxu0 %v1648_v32  ;;  %1176 = vmatpush3.msra.mxu1 %v282_v31 }
  0x55   : > { %1177 = vmatprep.mubr.f32.mxu1 %v280_v33  ;;  %1143 = vmatmul.mubr.f32.vlgmr.msra.gmra.mxu0 %v1652_v34 }
  0x56   : > { %1178 = vmatmul.mubr.f32.vlgmr.msra.gmra.mxu1 %v281_v35  ;;  %1180 = vmatprep.subr.mxu0 %v485_v36  ;;  %v994_v35 = vld [vmem:[%s1723_s4] ss:$0 sm:$0xff] }
  0x57   : > { %1212 = vmatprep.mubr.f32.mxu0 %v467_v37  ;;  %1181 = vmatpush3.msra.mxu0 %v485_v36 }
  0x58   : > { %1182 = vmatprep.subr.mxu0 %v484_v38  ;;  %1215 = vmatprep.subr.mxu1 %v623_v54 }
  0x59   : > { %1183 = vmatpush3.msra.mxu0 %v484_v38  ;;  %1216 = vmatpush3.msra.mxu1 %v623_v54  ;;  %v784_v54 = vld [vmem:[#allocation6 + $0x138] sm:$0xff] }
  0x5a   : > { %1184 = vmatprep.subr.mxu0 %v483_v39  ;;  %1217 = vmatprep.subr.mxu1 %v622_v56 }
  0x5b   : > { %1185 = vmatpush3.msra.mxu0 %v483_v39  ;;  %1218 = vmatpush3.msra.mxu1 %v622_v56  ;;  %v782_v56 = vld [vmem:[#allocation6 + $0x128] sm:$0xff] }
  0x5c   : > { %1186 = vmatprep.subr.mxu0 %v482_v40  ;;  %1219 = vmatprep.subr.mxu1 %v621_v58 }
  0x5d   : > { %1187 = vmatpush3.msra.mxu0 %v482_v40  ;;  %1220 = vmatpush3.msra.mxu1 %v621_v58  ;;  %v780_v58 = vld [vmem:[#allocation6 + $0x118] sm:$0xff] }
  0x5e   : > { %1188 = vmatprep.subr.mxu0 %v481_v41  ;;  %1221 = vmatprep.subr.mxu1 %v620_v60 }
  0x5f   : > { %1189 = vmatpush3.msra.mxu0 %v481_v41  ;;  %1222 = vmatpush3.msra.mxu1 %v620_v60  ;;  %v778_v60 = vld [vmem:[#allocation6 + $0x108] sm:$0xff] }
  0x60   : > { %1190 = vmatprep.subr.mxu0 %v480_v42  ;;  %1223 = vmatprep.subr.mxu1 %v619_v62 }
  0x61   : > { %1191 = vmatpush3.msra.mxu0 %v480_v42  ;;  %1224 = vmatpush3.msra.mxu1 %v619_v62 }
  0x62   : > { %1192 = vmatprep.subr.mxu0 %v479_v43  ;;  %1225 = vmatprep.subr.mxu1 %v618_v0 }
  0x63   : > { %1193 = vmatpush3.msra.mxu0 %v479_v43  ;;  %1226 = vmatpush3.msra.mxu1 %v618_v0 }
  0x64   : > { %1194 = vmatprep.subr.mxu0 %v478_v44  ;;  %1227 = vmatprep.subr.mxu1 %v617_v2 }
  0x65   : > { %1195 = vmatpush3.msra.mxu0 %v478_v44  ;;  %1228 = vmatpush3.msra.mxu1 %v617_v2  ;;  %v791_v44 = vld [vmem:[#allocation6 + $0x170] sm:$0xff] }
  0x66   : > { %1196 = vmatprep.subr.mxu0 %v477_v45  ;;  %1229 = vmatprep.subr.mxu1 %v616_v3 }
  0x67   : > { %1197 = vmatpush3.msra.mxu0 %v477_v45  ;;  %1230 = vmatpush3.msra.mxu1 %v616_v3  ;;  %v790_v45 = vld [vmem:[#allocation6 + $0x168] sm:$0xff] }
  0x68   : > { %1198 = vmatprep.subr.mxu0 %v476_v46  ;;  %1231 = vmatprep.subr.mxu1 %v615_v4 }
  0x69   : > { %1199 = vmatpush3.msra.mxu0 %v476_v46  ;;  %1232 = vmatpush3.msra.mxu1 %v615_v4  ;;  %v789_v46 = vld [vmem:[#allocation6 + $0x160] sm:$0xff] }
  0x6a   : > { %1200 = vmatprep.subr.mxu0 %v475_v47  ;;  %1233 = vmatprep.subr.mxu1 %v614_v5 }
  0x6b   : > { %1201 = vmatpush3.msra.mxu0 %v475_v47  ;;  %1234 = vmatpush3.msra.mxu1 %v614_v5  ;;  %v788_v47 = vld [vmem:[#allocation6 + $0x158] sm:$0xff]  ;;  %v995_v5 = vld [vmem:[%s1724_s5] ss:$0 sm:$0xff] }
  0x6c   : > { %1202 = vmatprep.subr.mxu0 %v474_v48  ;;  %1235 = vmatprep.subr.mxu1 %v613_v6 }
  0x6d   : > { %1203 = vmatpush3.msra.mxu0 %v474_v48  ;;  %1236 = vmatpush3.msra.mxu1 %v613_v6 }
  0x6e   : > { %1204 = vmatprep.subr.mxu0 %v473_v49  ;;  %1237 = vmatprep.subr.mxu1 %v612_v8 }
  0x6f   : > { %1205 = vmatpush3.msra.mxu0 %v473_v49  ;;  %1238 = vmatpush3.msra.mxu1 %v612_v8 }
  0x70   : > { %1206 = vmatprep.subr.mxu0 %v472_v50  ;;  %1239 = vmatprep.subr.mxu1 %v611_v10 }
  0x71   : > { %1207 = vmatpush3.msra.mxu0 %v472_v50  ;;  %1240 = vmatpush3.msra.mxu1 %v611_v10 }
  0x72   : > { %1208 = vmatprep.subr.mxu0 %v471_v51  ;;  %1241 = vmatprep.subr.mxu1 %v610_v12 }
  0x73   : > { %1209 = vmatpush3.msra.mxu0 %v471_v51  ;;  %1242 = vmatpush3.msra.mxu1 %v610_v12  ;;  %v787_v51 = vld [vmem:[#allocation6 + $0x150] sm:$0xff] }
  0x74   : > { %1210 = vmatprep.subr.mxu0 %v470_v52  ;;  %1243 = vmatprep.subr.mxu1 %v609_v14 }
  0x75   : > { %1211 = vmatpush3.msra.mxu0 %v470_v52  ;;  %1244 = vmatpush3.msra.mxu1 %v609_v14  ;;  %v786_v52 = vld [vmem:[#allocation6 + $0x148] sm:$0xff] }
  0x76   : > { %1213 = vmatmul.mubr.f32.vlgmr.msra.gmra.mxu0 %v468_v53  ;;  %1250 = vmatprep.subr.mxu0 %v604_v55  ;;  %v785_v53 = vld [vmem:[#allocation6 + $0x140] sm:$0xff] }
  0x77   : > { %1251 = vmatpush3.msra.mxu0 %v604_v55  ;;  %1245 = vmatprep.subr.mxu1 %v608_v16  ;;  %v783_v55 = vld [vmem:[#allocation6 + $0x130] sm:$0xff] }
  0x78   : > { %1252 = vmatprep.subr.mxu0 %v603_v57  ;;  %1246 = vmatpush3.msra.mxu1 %v608_v16 }
  0x79   : > { %1253 = vmatpush3.msra.mxu0 %v603_v57  ;;  %1285 = vmatprep.subr.mxu1 %v792_v19  ;;  %v781_v57 = vld [vmem:[#allocation6 + $0x120] sm:$0xff] }
  0x7a   : > { %1254 = vmatprep.subr.mxu0 %v602_v59 }
  0x7b   : > { %1255 = vmatpush3.msra.mxu0 %v602_v59  ;;  %v779_v59 = vld [vmem:[#allocation6 + $0x110] sm:$0xff] }
  0x7c   : > { %1256 = vmatprep.subr.mxu0 %v601_v61 }
  0x7d   : > { %1257 = vmatpush3.msra.mxu0 %v601_v61  ;;  %v777_v61 = vld [vmem:[#allocation6 + $0x100] sm:$0xff] }
  0x7e   : > { %1258 = vmatprep.subr.mxu0 %v600_v63 }
  0x7f   : > { %1259 = vmatpush3.msra.mxu0 %v600_v63 }
  0x80   : > { %1260 = vmatprep.subr.mxu0 %v599_v1 }
  0x81   : > { %1261 = vmatpush3.msra.mxu0 %v599_v1 }
  0x82   : > { %1262 = vmatprep.subr.mxu0 %v598_v7 }
  0x83   : > { %1263 = vmatpush3.msra.mxu0 %v598_v7 }
  0x84   : > { %1264 = vmatprep.subr.mxu0 %v597_v9 }
  0x85   : > { %1265 = vmatpush3.msra.mxu0 %v597_v9 }
  0x86   : > { %1266 = vmatprep.subr.mxu0 %v596_v11 }
  0x87   : > { %1267 = vmatpush3.msra.mxu0 %v596_v11 }
  0x88   : > { %1268 = vmatprep.subr.mxu0 %v595_v13 }
  0x89   : > { %1269 = vmatpush3.msra.mxu0 %v595_v13 }
  0x8a   : > { %1270 = vmatprep.subr.mxu0 %v594_v15 }
  0x8b   : > { %1271 = vmatpush3.msra.mxu0 %v594_v15 }
  0x8c   : > { %1272 = vmatprep.subr.mxu0 %v593_v17 }
  0x8d   : > { %1273 = vmatpush3.msra.mxu0 %v593_v17 }
  0x8e   : > { %1274 = vmatprep.subr.mxu0 %v592_v20 }
  0x8f   : > { %1275 = vmatpush3.msra.mxu0 %v592_v20 }
  0x90   : > { %1276 = vmatprep.subr.mxu0 %v591_v21 }
  0x91   : > { %1277 = vmatpush3.msra.mxu0 %v591_v21 }
  0x92   : > { %1278 = vmatprep.subr.mxu0 %v590_v22 }
  0x93   : > { %1279 = vmatpush3.msra.mxu0 %v590_v22 }
  0x94   : > { %1280 = vmatprep.subr.mxu0 %v589_v23 }
  0x95   : > { %1281 = vmatpush3.msra.mxu0 %v589_v23 }
 0x115   : > { %v1144_v24 = vpop.f32.mrf.mxu0 }
 0x116   : > { %v1179_v25 = vpop.f32.mrf.mxu1 }
 0x117   : > { %v383_v26 = vpop.f32.mrf.mxu0  ;;  %v464_v28 = vadd.f32 %v1179_v25, %v1144_v24 }
 0x118   : > { %v458_v27 = vpop.f32.mrf.mxu1 }
 0x119   : > { %v459_v31 = vadd.f32 %v458_v27, %v383_v26 }
 0x136   : > { %v1214_v29 = vpop.f32.mrf.mxu0 }
 0x137   : > { %v562_v33 = vadd.f32 %v1214_v29, %v464_v28 }
 0x138   : > { %v552_v36 = vpop.f32.mrf.mxu0 }
 0x139   : > { %v571_v37 = vmul.f32 %v993_v30, %v562_v33  ;;  %v561_v38 = vadd.f32 %v552_v36, %v459_v31 }
 0x13b   : > { %v580_v39 = vadd.f32 %v994_v35, %v571_v37  ;;  %v570_v40 = vmul.f32 %v993_v30, %v561_v38 }
 0x13d   : > { %v582_v41 = vmax.f32 %v580_v39, 0.0  ;;  %v579_v42 = vadd.f32 %v994_v35, %v570_v40 }
 0x13f   : > { %586 = vst [vmem:[#allocation2 + $0x9] sm:$0xff] %v582_v41  ;;  %v581_v43 = vmax.f32 %v579_v42, 0.0 }
 0x141   : > { %585 = vst [vmem:[#allocation2 + $0x1] sm:$0xff] %v581_v43  ;;  %1247 = vmatprep.mubr.f32.mxu1 %v581_v43 }
 0x142   : > { %1248 = vmatmul.mubr.f32.vlgmr.msra.gmra.mxu1 %v582_v41 }
 0x143   : > { %1286 = vmatpush3.msra.mxu1 %v792_v19 }
 0x144   : > { %1287 = vmatprep.subr.mxu1 %v791_v44 }
 0x145   : > { %1288 = vmatpush3.msra.mxu1 %v791_v44 }
 0x146   : > { %1289 = vmatprep.subr.mxu1 %v790_v45  ;;  %v775_v62 = vld [vmem:[#allocation2 + $0xa] sm:$0xff] }
 0x147   : > { %1290 = vmatpush3.msra.mxu1 %v790_v45 }
 0x148   : > { %v587_v48 = vld [vmem:[#allocation2] sm:$0xff]  ;;  %v588_v49 = vld [vmem:[#allocation2 + $0x8] sm:$0xff]  ;;  %1291 = vmatprep.subr.mxu1 %v789_v46 }
 0x149   : > { %v774_v50 = vld [vmem:[#allocation2 + $0x2] sm:$0xff]  ;;  %1282 = vmatprep.mubr.f32.mxu0 %v587_v48  ;;  %1292 = vmatpush3.msra.mxu1 %v789_v46 }
 0x14a   : > { %1317 = vmatprep.mubr.f32.mxu1 %v774_v50  ;;  %1283 = vmatmul.mubr.f32.vlgmr.msra.gmra.mxu0 %v588_v49 }
 0x14b   : > { %1293 = vmatprep.subr.mxu1 %v788_v47 }
 0x14c   : > { %1294 = vmatpush3.msra.mxu1 %v788_v47 }
 0x14d   : > { %1295 = vmatprep.subr.mxu1 %v787_v51 }
 0x14e   : > { %1296 = vmatpush3.msra.mxu1 %v787_v51 }
 0x14f   : > { %1297 = vmatprep.subr.mxu1 %v786_v52 }
 0x150   : > { %1298 = vmatpush3.msra.mxu1 %v786_v52 }
 0x151   : > { %1299 = vmatprep.subr.mxu1 %v785_v53 }
 0x152   : > { %1300 = vmatpush3.msra.mxu1 %v785_v53 }
 0x153   : > { %1301 = vmatprep.subr.mxu1 %v784_v54 }
 0x154   : > { %1302 = vmatpush3.msra.mxu1 %v784_v54 }
 0x155   : > { %1303 = vmatprep.subr.mxu1 %v783_v55 }
 0x156   : > { %1304 = vmatpush3.msra.mxu1 %v783_v55 }
 0x157   : > { %1305 = vmatprep.subr.mxu1 %v782_v56 }
 0x158   : > { %1306 = vmatpush3.msra.mxu1 %v782_v56 }
 0x159   : > { %1307 = vmatprep.subr.mxu1 %v781_v57 }
 0x15a   : > { %1308 = vmatpush3.msra.mxu1 %v781_v57 }
 0x15b   : > { %1309 = vmatprep.subr.mxu1 %v780_v58 }
 0x15c   : > { %1310 = vmatpush3.msra.mxu1 %v780_v58 }
 0x15d   : > { %1311 = vmatprep.subr.mxu1 %v779_v59 }
 0x15e   : > { %1312 = vmatpush3.msra.mxu1 %v779_v59 }
 0x15f   : > { %1313 = vmatprep.subr.mxu1 %v778_v60 }
 0x160   : > { %1314 = vmatpush3.msra.mxu1 %v778_v60 }
 0x161   : > { %1315 = vmatprep.subr.mxu1 %v777_v61 }
 0x162   : > { %1316 = vmatpush3.msra.mxu1 %v777_v61 }
 0x163   : > { %1318 = vmatmul.mubr.f32.vlgmr.msra.gmra.mxu1 %v775_v62 }
 0x202   : > { %v1249_v63 = vpop.f32.mrf.mxu1 }
 0x204   : > { %v690_v1 = vpop.f32.mrf.mxu1 }
 0x20a   : > { %v1284_v0 = vpop.f32.mrf.mxu0 }
 0x20b   : > { %v771_v3 = vadd.f32 %v1284_v0, %v1249_v63 }
 0x20c   : > { %v765_v2 = vpop.f32.mrf.mxu0 }
 0x20d   : > { %v766_v6 = vadd.f32 %v765_v2, %v690_v1 }
 0x223   : > { %v1319_v4 = vpop.f32.mrf.mxu1 }
 0x224   : > { %v869_v7 = vadd.f32 %v1319_v4, %v771_v3 }
 0x225   : > { %v859_v8 = vpop.f32.mrf.mxu1 }
 0x226   : > { %v880_v9 = vadd.f32 %v995_v5, %v869_v7  ;;  %v868_v10 = vadd.f32 %v859_v8, %v766_v6 }
 0x228   : > { %v882_v11 = vadd.f32 %v880_v9, %v1652_v34  ;;  %v879_v12 = vadd.f32 %v995_v5, %v868_v10 }
 0x22a   : > { %884 = vst [vmem:[%s274_s26 + $0x8] sm:$0xff] %v882_v11  ;;  %v881_v13 = vadd.f32 %v879_v12, %v1648_v32 }
 0x22c   : > { %883 = vst [vmem:[%s274_s26] sm:$0xff] %v881_v13 }
 0x22d   : > { %1451 = shalt.err (!%p1448_p3)
}
 0x22e   : > { %s1452_s16 = scalar_lea.hbm %s1676_s11, 256  ;;  %s1456_s19 = scalar_lea.hbm %s1725_s6, 512 }
 0x22f   : > { %p1453_p2 = scmp.ne.s32.totalorder %s1676_s11, %s1452_s16  ;;  %p1457_p7 = scmp.lt.s32.totalorder %s1676_s11, %s1725_s6 }
 0x230   : > { %p1458_p6 = scmp.lt.s32.totalorder %s1456_s19, %s1452_s16 }
 0x231   : > { %p1454_p4 = pnand %p1453_p2, %p1589_p5 }
 0x232   : > { %p1459_p9 = por %p1458_p6, %p1457_p7 }
 0x233   : > { %p1455_p13 = pneg %p1454_p4 }
 0x235   : > { %p1460_p10 = pnand %p1459_p9, %p1455_p13 }
 0x237   : > { %1463 = shalt.err (!%p1460_p10)
}
 0x238   : > { %s1514_s29 = smov 128   ;;  %s1515_s9 = smov 8  }
 0x239   : > { %1329 = dma.vmem_to_hbm [thread:$0]  (%p1589_p5), %s1671_s28, 256, %s1676_s11, %s1679_s12, %s1514_s29, %s1514_s29, %s1515_s9  }
 0x23a PF: > { %p1346_p12 = scmp.ge.s32.totalorder %s1506_s24, 2  ;;  %s914_s10 = sand.u32 1, %s1494_s21  }
 0x23b   : > { %p1735_p8 = scmp.ne.s32.totalorder %s1728_s8, 0  ;;  %s915_s25 = scalar_lea.sflag [#allocation5], %s914_s10 }
 0x23d   : > { %p1339_p11 = pnand %p1346_p12, %p1735_p8 }
 0x23f   : > { %p1340_p0 = pneg %p1339_p11 }
 0x241   : > { %1489 = dma.done.wait (%p1340_p0), %s915_s25, 256  }
 0x242   : > { %1491 = vsyncadd (%p1340_p0), %s915_s25, 4294967040  ;;  %p18_p1 = scmp.ge.s32.totalorder %s1576_s27, 4   ;;  %s1736_s21 = smov %s1498_s22 }
 0x243   : > { %s1737_s22 = smov %s1502_s23  ;;  %s1738_s23 = smov %s1587_s30 }
 0x244   : > { %s1739_s24 = smov %s1576_s27  ;;  %20 = sbr.rel (!%p18_p1) target bundleno = 5 (0x5), region = 92 }
 0x249   :  { %920 = vsyncpa [#allocation4], 1 }
 0x24a   :  { %922 = vsyncpa [#allocation4 + $0x1], 1 }
 0x24b   :  { %923 = vsyncpa [#allocation7], 1 }
 0x24c   :  { %924 = vsyncpa [#allocation5], 1 }
 0x24d   :  { %926 = vsyncpa [#allocation5 + $0x1], 1 }

</bundles_post_ra>
